<compile_context>
chip_gen: v7x
topology: tpu7x:2x2x1
jax: 0.10.0
libtpu: 0.0.40
codegen_flags: <defaults>
</compile_context>

<pallas_src>
import functools
import math

import jax
import jax.numpy as jnp
from jax.experimental import pallas as pl
from jax.experimental.pallas import tpu as pltpu


# --------------------------------------------------------------------------
# Tiling helper
# --------------------------------------------------------------------------

def _pick_tile(dim, preferred):
    """Use the preferred (MXU/lane-aligned) tile when it divides dim, else the
    full dimension (small/toy shapes fall back to whole-array blocks)."""
    if dim % preferred == 0:
        return preferred
    return dim


# --------------------------------------------------------------------------
# Kernel A: tiled matmul + bias (+ optional relu)
# --------------------------------------------------------------------------

def _linear_kernel(x_ref, w_ref, b_ref, o_ref, acc_ref, *, act):
    @pl.when(pl.program_id(2) == 0)
    def _():
        acc_ref[...] = jnp.zeros_like(acc_ref)

    acc_ref[...] += jnp.dot(x_ref[...], w_ref[...],
                            preferred_element_type=jnp.float32)

    @pl.when(pl.program_id(2) == pl.num_programs(2) - 1)
    def _():
        y = acc_ref[...] + b_ref[...].astype(jnp.float32)
        if act == "relu":
            y = jnp.maximum(y, 0.0)
        o_ref[...] = y.astype(o_ref.dtype)


def linear_pallas(x, w, b, act=None, *, tm=256, tn=256, tk=512):
    """y = act(x @ w + b).  x: (M, K), w: (K, N), b: (N,)."""
    M, K = x.shape
    N = w.shape[1]
    tm, tn, tk = _pick_tile(M, tm), _pick_tile(N, tn), _pick_tile(K, tk)
    return pl.pallas_call(
        functools.partial(_linear_kernel, act=act),
        out_shape=jax.ShapeDtypeStruct((M, N), x.dtype),
        grid=(M // tm, N // tn, K // tk),
        in_specs=[
            pl.BlockSpec((tm, tk), lambda i, j, k: (i, k)),
            pl.BlockSpec((tk, tn), lambda i, j, k: (k, j)),
            pl.BlockSpec((1, tn), lambda i, j, k: (0, j)),
        ],
        out_specs=pl.BlockSpec((tm, tn), lambda i, j, k: (i, j)),
        scratch_shapes=[pltpu.VMEM((tm, tn), jnp.float32)],
        compiler_params=pltpu.CompilerParams(
            dimension_semantics=("parallel", "parallel", "arbitrary")),
    )(x, w, b.reshape(1, N))


# --------------------------------------------------------------------------
# Kernel B: attention (one batch element per program, all heads fused)
# --------------------------------------------------------------------------

def _attend_all_heads(q, k, v, m, o_ref, *, nhead):
    lq, e = q.shape
    dh = e // nhead
    for h in range(nhead):
        qh = q[:, h * dh:(h + 1) * dh]
        kh = k[:, h * dh:(h + 1) * dh]
        vh = v[:, h * dh:(h + 1) * dh]
        # scores = qh @ kh^T  (contract on Dh)
        s = jax.lax.dot_general(qh, kh, (((1,), (1,)), ((), ())),
                                preferred_element_type=jnp.float32)
        s = s + m
        s = s - jnp.max(s, axis=-1, keepdims=True)
        p = jnp.exp(s)
        denom = jnp.sum(p, axis=-1, keepdims=True)
        oh = jnp.dot(p, vh, preferred_element_type=jnp.float32) / denom
        o_ref[0, :, h * dh:(h + 1) * dh] = oh.astype(o_ref.dtype)


def _self_attn_kernel(qkv_ref, m_ref, o_ref, *, nhead, e, scale):
    x = qkv_ref[0].astype(jnp.float32)            # (L, 3E)
    q = x[:, 0:e] * scale
    k = x[:, e:2 * e]
    v = x[:, 2 * e:3 * e]
    _attend_all_heads(q, k, v, m_ref[...].astype(jnp.float32), o_ref,
                      nhead=nhead)


def _cross_attn_kernel(q_ref, kv_ref, m_ref, o_ref, *, nhead, e, scale):
    q = q_ref[0].astype(jnp.float32) * scale      # (T, E)
    kv = kv_ref[0].astype(jnp.float32)            # (S, 2E)
    k = kv[:, 0:e]
    v = kv[:, e:2 * e]
    _attend_all_heads(q, k, v, m_ref[...].astype(jnp.float32), o_ref,
                      nhead=nhead)


def self_attention_pallas(qkv3, mask, nhead):
    """qkv3: (N, L, 3E) packed q|k|v.  Returns (N, L, E)."""
    N, L, three_e = qkv3.shape
    E = three_e // 3
    scale = 1.0 / math.sqrt(E // nhead)
    if mask is None:
        mask = jnp.zeros((L, L), jnp.float32)
    return pl.pallas_call(
        functools.partial(_self_attn_kernel, nhead=nhead, e=E, scale=scale),
        out_shape=jax.ShapeDtypeStruct((N, L, E), qkv3.dtype),
        grid=(N,),
        in_specs=[
            pl.BlockSpec((1, L, three_e), lambda n: (n, 0, 0)),
            pl.BlockSpec((L, L), lambda n: (0, 0)),          # shared mask tile
        ],
        out_specs=pl.BlockSpec((1, L, E), lambda n: (n, 0, 0)),
        compiler_params=pltpu.CompilerParams(dimension_semantics=("parallel",)),
    )(qkv3, mask)


def cross_attention_pallas(q3, kv3, mask, nhead):
    """q3: (N, T, E); kv3: (N, S, 2E) packed k|v.  Returns (N, T, E)."""
    N, T, E = q3.shape
    S = kv3.shape[1]
    scale = 1.0 / math.sqrt(E // nhead)
    if mask is None:
        mask = jnp.zeros((T, S), jnp.float32)
    return pl.pallas_call(
        functools.partial(_cross_attn_kernel, nhead=nhead, e=E, scale=scale),
        out_shape=jax.ShapeDtypeStruct((N, T, E), q3.dtype),
        grid=(N,),
        in_specs=[
            pl.BlockSpec((1, T, E), lambda n: (n, 0, 0)),
            pl.BlockSpec((1, S, 2 * E), lambda n: (n, 0, 0)),
            pl.BlockSpec((T, S), lambda n: (0, 0)),          # shared mask tile
        ],
        out_specs=pl.BlockSpec((1, T, E), lambda n: (n, 0, 0)),
        compiler_params=pltpu.CompilerParams(dimension_semantics=("parallel",)),
    )(q3, kv3, mask)


# --------------------------------------------------------------------------
# Kernel C: tiled matmul + bias + residual add + LayerNorm (fused epilogue)
# --------------------------------------------------------------------------

def _linear_add_ln_kernel(x_ref, w_ref, b_ref, r_ref, g_ref, bt_ref, o_ref,
                          acc_ref, *, eps):
    @pl.when(pl.program_id(1) == 0)
    def _():
        acc_ref[...] = jnp.zeros_like(acc_ref)

    acc_ref[...] += jnp.dot(x_ref[...], w_ref[...],
                            preferred_element_type=jnp.float32)

    @pl.when(pl.program_id(1) == pl.num_programs(1) - 1)
    def _():
        z = (acc_ref[...] + b_ref[...].astype(jnp.float32)
             + r_ref[...].astype(jnp.float32))
        mu = jnp.mean(z, axis=-1, keepdims=True)
        var = jnp.mean(jnp.square(z - mu), axis=-1, keepdims=True)
        y = (z - mu) * jax.lax.rsqrt(var + eps)
        o_ref[...] = (y * g_ref[...] + bt_ref[...]).astype(o_ref.dtype)


def linear_add_ln_pallas(x, w, b, residual, gamma, beta, *, eps=1e-5,
                         tm=256, tk=512):
    """LayerNorm(residual + x @ w + b).  x: (M, K), w: (K, E), residual: (M, E)."""
    M, K = x.shape
    E = w.shape[1]
    tm, tk = _pick_tile(M, tm), _pick_tile(K, tk)
    return pl.pallas_call(
        functools.partial(_linear_add_ln_kernel, eps=eps),
        out_shape=jax.ShapeDtypeStruct((M, E), x.dtype),
        grid=(M // tm, K // tk),
        in_specs=[
            pl.BlockSpec((tm, tk), lambda i, k: (i, k)),
            pl.BlockSpec((tk, E), lambda i, k: (k, 0)),
            pl.BlockSpec((1, E), lambda i, k: (0, 0)),
            pl.BlockSpec((tm, E), lambda i, k: (i, 0)),
            pl.BlockSpec((1, E), lambda i, k: (0, 0)),
            pl.BlockSpec((1, E), lambda i, k: (0, 0)),
        ],
        out_specs=pl.BlockSpec((tm, E), lambda i, k: (i, 0)),
        scratch_shapes=[pltpu.VMEM((tm, E), jnp.float32)],
        compiler_params=pltpu.CompilerParams(
            dimension_semantics=("parallel", "arbitrary")),
    )(x, w, b.reshape(1, E), residual, gamma.reshape(1, E), beta.reshape(1, E))


# --------------------------------------------------------------------------
# Kernel D: plain LayerNorm (final encoder/decoder norms, no residual)
# --------------------------------------------------------------------------

def _ln_kernel(x_ref, g_ref, b_ref, o_ref, *, eps):
    z = x_ref[...].astype(jnp.float32)
    mu = jnp.mean(z, axis=-1, keepdims=True)
    var = jnp.mean(jnp.square(z - mu), axis=-1, keepdims=True)
    y = (z - mu) * jax.lax.rsqrt(var + eps)
    o_ref[...] = (y * g_ref[...] + b_ref[...]).astype(o_ref.dtype)


def layer_norm_pallas(x, gamma, beta, *, eps=1e-5, tm=256):
    M, E = x.shape
    tm = _pick_tile(M, tm)
    return pl.pallas_call(
        functools.partial(_ln_kernel, eps=eps),
        out_shape=jax.ShapeDtypeStruct((M, E), x.dtype),
        grid=(M // tm,),
        in_specs=[
            pl.BlockSpec((tm, E), lambda i: (i, 0)),
            pl.BlockSpec((1, E), lambda i: (0, 0)),
            pl.BlockSpec((1, E), lambda i: (0, 0)),
        ],
        out_specs=pl.BlockSpec((tm, E), lambda i: (i, 0)),
        compiler_params=pltpu.CompilerParams(dimension_semantics=("parallel",)),
    )(x, gamma.reshape(1, E), beta.reshape(1, E))


# --------------------------------------------------------------------------
# Pure-JAX reference ops (same interfaces; used to check the Pallas kernels)
# --------------------------------------------------------------------------

def linear_ref(x, w, b, act=None):
    y = x @ w + b
    if act == "relu":
        y = jnp.maximum(y, 0.0)
    return y


def linear_add_ln_ref(x, w, b, residual, gamma, beta, eps=1e-5):
    z = x @ w + b + residual
    mu = z.mean(-1, keepdims=True)
    var = ((z - mu) ** 2).mean(-1, keepdims=True)
    return (z - mu) / jnp.sqrt(var + eps) * gamma + beta


def layer_norm_ref(x, gamma, beta, eps=1e-5):
    mu = x.mean(-1, keepdims=True)
    var = ((x - mu) ** 2).mean(-1, keepdims=True)
    return (x - mu) / jnp.sqrt(var + eps) * gamma + beta


def _attn_ref(q3, k3, v3, mask, nhead):
    N, Lq, E = q3.shape
    Lk = k3.shape[1]
    Dh = E // nhead
    q = q3.reshape(N, Lq, nhead, Dh).transpose(0, 2, 1, 3)
    k = k3.reshape(N, Lk, nhead, Dh).transpose(0, 2, 1, 3)
    v = v3.reshape(N, Lk, nhead, Dh).transpose(0, 2, 1, 3)
    s = jnp.einsum("nhqd,nhkd->nhqk", q, k) / math.sqrt(Dh)
    if mask is not None:
        s = s + mask
    p = jax.nn.softmax(s, axis=-1)
    o = jnp.einsum("nhqk,nhkd->nhqd", p, v)
    return o.transpose(0, 2, 1, 3).reshape(N, Lq, E)


def self_attention_ref(qkv3, mask, nhead):
    E = qkv3.shape[-1] // 3
    return _attn_ref(qkv3[..., :E], qkv3[..., E:2 * E], qkv3[..., 2 * E:],
                     mask, nhead)


def cross_attention_ref(q3, kv3, mask, nhead):
    E = q3.shape[-1]
    return _attn_ref(q3, kv3[..., :E], kv3[..., E:], mask, nhead)


# --------------------------------------------------------------------------
# Transformer forward (glue in plain JAX, hot paths in Pallas kernels)
# --------------------------------------------------------------------------

def encoder_layer(x3, p, nhead, src_mask, ops):
    N, S, E = x3.shape
    x2d = x3.reshape(N * S, E)
    sa = p["self_attn"]
    qkv = ops["linear"](x2d, sa["w_qkv"], sa["b_qkv"])              # (N*S, 3E)
    a3 = ops["self_attn"](qkv.reshape(N, S, 3 * E), src_mask, nhead)
    x2d = ops["linear_add_ln"](a3.reshape(N * S, E), sa["wo"], sa["bo"],
                               x2d, p["norm1_g"], p["norm1_b"])
    h = ops["linear"](x2d, p["w1"], p["b1"], act="relu")
    x2d = ops["linear_add_ln"](h, p["w2"], p["b2"],
                               x2d, p["norm2_g"], p["norm2_b"])
    return x2d.reshape(N, S, E)


def decoder_layer(y3, mem3, p, nhead, tgt_mask, memory_mask, ops):
    N, T, E = y3.shape
    S = mem3.shape[1]
    y2d = y3.reshape(N * T, E)

    sa = p["self_attn"]
    qkv = ops["linear"](y2d, sa["w_qkv"], sa["b_qkv"])              # (N*T, 3E)
    a3 = ops["self_attn"](qkv.reshape(N, T, 3 * E), tgt_mask, nhead)
    y2d = ops["linear_add_ln"](a3.reshape(N * T, E), sa["wo"], sa["bo"],
                               y2d, p["norm1_g"], p["norm1_b"])

    ca = p["cross_attn"]
    wq, bq = ca["w_qkv"][:, :E], ca["b_qkv"][:E]
    wkv, bkv = ca["w_qkv"][:, E:], ca["b_qkv"][E:]
    q = ops["linear"](y2d, wq, bq)                                  # (N*T, E)
    kv = ops["linear"](mem3.reshape(N * S, E), wkv, bkv)            # (N*S, 2E)
    a3 = ops["cross_attn"](q.reshape(N, T, E), kv.reshape(N, S, 2 * E),
                           memory_mask, nhead)
    y2d = ops["linear_add_ln"](a3.reshape(N * T, E), ca["wo"], ca["bo"],
                               y2d, p["norm2_g"], p["norm2_b"])

    h = ops["linear"](y2d, p["w1"], p["b1"], act="relu")
    y2d = ops["linear_add_ln"](h, p["w2"], p["b2"],
                               y2d, p["norm3_g"], p["norm3_b"])
    return y2d.reshape(N, T, E)


def transformer_forward(params, src, tgt, nhead, *, src_mask=None, tgt_mask=None,
                        memory_mask=None, ops):
    S, N, E = src.shape
    T = tgt.shape[0]
    if tgt.shape[1] != N:
        raise RuntimeError("the batch number of src and tgt must be equal")

    # Internal layout: (N, L, E).  Two boundary transposes total.
    x3 = jnp.transpose(src, (1, 0, 2))
    y3 = jnp.transpose(tgt, (1, 0, 2))

    for p in params["enc_layers"]:
        x3 = encoder_layer(x3, p, nhead, src_mask, ops)
    mem3 = ops["layer_norm"](x3.reshape(N * S, E),
                             params["enc_norm_g"], params["enc_norm_b"]
                             ).reshape(N, S, E)

    for p in params["dec_layers"]:
        y3 = decoder_layer(y3, mem3, p, nhead, tgt_mask, memory_mask, ops)
    out3 = ops["layer_norm"](y3.reshape(N * T, E),
                             params["dec_norm_g"], params["dec_norm_b"]
                             ).reshape(N, T, E)
    return jnp.transpose(out3, (1, 0, 2))        # back to (T, N, E)


# --------------------------------------------------------------------------
# Deterministic parameter init (xavier_uniform on dim>1 params, zero biases)
# --------------------------------------------------------------------------

def xavier(key, out_features, in_features):
    bound = math.sqrt(6.0 / (in_features + out_features))
    w = jax.random.uniform(key, (out_features, in_features), jnp.float32,
                           -bound, bound)
    return w.T  # store as (in, out) for `x @ w`


def init_mha(key, E):
    k1, k2 = jax.random.split(key)
    return dict(
        w_qkv=xavier(k1, 3 * E, E),                 # packed (E, 3E): [q | k | v]
        b_qkv=jnp.zeros((3 * E,), jnp.float32),
        wo=xavier(k2, E, E), bo=jnp.zeros((E,), jnp.float32),
    )


def init_enc_layer(key, E, F):
    ks = jax.random.split(key, 3)
    return dict(
        self_attn=init_mha(ks[0], E),
        w1=xavier(ks[1], F, E), b1=jnp.zeros((F,), jnp.float32),
        w2=xavier(ks[2], E, F), b2=jnp.zeros((E,), jnp.float32),
        norm1_g=jnp.ones((E,), jnp.float32), norm1_b=jnp.zeros((E,), jnp.float32),
        norm2_g=jnp.ones((E,), jnp.float32), norm2_b=jnp.zeros((E,), jnp.float32),
    )


def init_dec_layer(key, E, F):
    ks = jax.random.split(key, 4)
    return dict(
        self_attn=init_mha(ks[0], E),
        cross_attn=init_mha(ks[1], E),
        w1=xavier(ks[2], F, E), b1=jnp.zeros((F,), jnp.float32),
        w2=xavier(ks[3], E, F), b2=jnp.zeros((E,), jnp.float32),
        norm1_g=jnp.ones((E,), jnp.float32), norm1_b=jnp.zeros((E,), jnp.float32),
        norm2_g=jnp.ones((E,), jnp.float32), norm2_b=jnp.zeros((E,), jnp.float32),
        norm3_g=jnp.ones((E,), jnp.float32), norm3_b=jnp.zeros((E,), jnp.float32),
    )


def init_params(key, E, F, n_enc, n_dec):
    keys = jax.random.split(key, n_enc + n_dec)
    return dict(
        enc_layers=[init_enc_layer(keys[i], E, F) for i in range(n_enc)],
        dec_layers=[init_dec_layer(keys[n_enc + i], E, F) for i in range(n_dec)],
        enc_norm_g=jnp.ones((E,), jnp.float32), enc_norm_b=jnp.zeros((E,), jnp.float32),
        dec_norm_g=jnp.ones((E,), jnp.float32), dec_norm_b=jnp.zeros((E,), jnp.float32),
    )


def generate_square_subsequent_mask(sz):
    return jnp.where(jnp.tril(jnp.ones((sz, sz), bool)), 0.0,
                     -jnp.inf).astype(jnp.float32)


# --------------------------------------------------------------------------

if __name__ == "__main__":
    # Small shapes consistent with nn.Transformer semantics:
    # src (S, N, E), tgt (T, N, E), output (T, N, E).
    S, T, N, E, H, F = 8, 12, 2, 32, 4, 64
    n_enc, n_dec = 2, 2

    key = jax.random.PRNGKey(0)
    k_src, k_tgt, k_par = jax.random.split(key, 3)
    src = jax.random.normal(k_src, (S, N, E), jnp.float32)
    tgt = jax.random.normal(k_tgt, (T, N, E), jnp.float32)
    params = init_params(k_par, E, F, n_enc, n_dec)
    tgt_mask = generate_square_subsequent_mask(T)

    pallas_ops = dict(linear=linear_pallas,
                      linear_add_ln=linear_add_ln_pallas,
                      layer_norm=layer_norm_pallas,
                      self_attn=self_attention_pallas,
                      cross_attn=cross_attention_pallas)
    ref_ops = dict(linear=linear_ref,
                   linear_add_ln=linear_add_ln_ref,
                   layer_norm=layer_norm_ref,
                   self_attn=self_attention_ref,
                   cross_attn=cross_attention_ref)

    # TODO(synk): dropout(p=0.1) is modeled as identity (eval-mode semantics);
    # key_padding_masks are not wired (they would fold into the additive mask).
    out = transformer_forward(params, src, tgt, H, tgt_mask=tgt_mask,
                              ops=pallas_ops)
    out = jax.block_until_ready(out)

    ref = transformer_forward(params, src, tgt, H, tgt_mask=tgt_mask,
                              ops=ref_ops)

    assert out.shape == (T, N, E)
    assert bool(jnp.allclose(out, ref, atol=1e-4, rtol=1e-4))
    print("KERNEL_OK")
</pallas_src>

<mosaic_0001>
module attributes {stable_mosaic.version = 11 : i64} {
  func.func @_linear_kernel(%arg0: i32, %arg1: i32, %arg2: i32, %arg3: memref<16x32xf32, #tpu.memory_space<vmem>>, %arg4: memref<32x96xf32, #tpu.memory_space<vmem>>, %arg5: memref<1x96xf32, #tpu.memory_space<vmem>>, %arg6: memref<16x96xf32, #tpu.memory_space<vmem>>, %arg7: memref<16x96xf32, #tpu.memory_space<vmem>>) attributes {dimension_semantics = [#tpu.dimension_semantics<parallel>, #tpu.dimension_semantics<parallel>, #tpu.dimension_semantics<arbitrary>], iteration_bounds = array<i64: 1, 1, 1>, scalar_prefetch = 0 : i64, scratch_operands = 1 : i64, tpu.core_type = #tpu.core_type<tc>, window_params = [{transform_indices = @transform_0, window_bounds = array<i64: 16, 32>}, {transform_indices = @transform_1, window_bounds = array<i64: 32, 96>}, {transform_indices = @transform_2, window_bounds = array<i64: 1, 96>}, {transform_indices = @transform_3, window_bounds = array<i64: 16, 96>}]} {
    %c0_i32 = arith.constant 0 : i32
    %0 = arith.cmpi eq, %arg2, %c0_i32 : i32
    %1 = arith.extui %0 : i1 to i32
    %c0_i32_0 = arith.constant 0 : i32
    %2 = arith.cmpi ne, %1, %c0_i32_0 : i32
    scf.if %2 {
      %cst_10 = arith.constant 0.000000e+00 : f32
      %12 = vector.broadcast %cst_10 : f32 to vector<16x96xf32>
      %c0_11 = arith.constant 0 : index
      %c0_12 = arith.constant 0 : index
      %13 = vector.load %arg7[%c0_11, %c0_12] : memref<16x96xf32, #tpu.memory_space<vmem>>, vector<16x96xf32>
      tpu.vector_store %arg7[%c0_11, %c0_12], %12 {strides = array<i32>} : memref<16x96xf32, #tpu.memory_space<vmem>>, vector<16x96xf32>,
    } else {
    }
    %c0 = arith.constant 0 : index
    %c0_1 = arith.constant 0 : index
    %3 = vector.load %arg7[%c0, %c0_1] : memref<16x96xf32, #tpu.memory_space<vmem>>, vector<16x96xf32>
    %c0_2 = arith.constant 0 : index
    %c0_3 = arith.constant 0 : index
    %4 = vector.load %arg3[%c0_2, %c0_3] : memref<16x32xf32, #tpu.memory_space<vmem>>, vector<16x32xf32>
    %c0_4 = arith.constant 0 : index
    %c0_5 = arith.constant 0 : index
    %5 = vector.load %arg4[%c0_4, %c0_5] : memref<32x96xf32, #tpu.memory_space<vmem>>, vector<32x96xf32>
    %cst = arith.constant dense<0.000000e+00> : vector<16x96xf32>
    %6 = tpu.matmul %4, %5, %cst {dimension_numbers = #tpu.dot_dimension_numbers<[1], [0], [0], [1], [0, 0, 1, 1], [], []>} : vector<16x32xf32>, vector<32x96xf32>, vector<16x96xf32> -> vector<16x96xf32>
    %7 = arith.addf %3, %6 : vector<16x96xf32>
    %c0_6 = arith.constant 0 : index
    %c0_7 = arith.constant 0 : index
    %8 = vector.load %arg7[%c0_6, %c0_7] : memref<16x96xf32, #tpu.memory_space<vmem>>, vector<16x96xf32>
    tpu.vector_store %arg7[%c0_6, %c0_7], %7 {strides = array<i32>} : memref<16x96xf32, #tpu.memory_space<vmem>>, vector<16x96xf32>,
    %c0_i32_8 = arith.constant 0 : i32
    %9 = arith.cmpi eq, %arg2, %c0_i32_8 : i32
    %10 = arith.extui %9 : i1 to i32
    %c0_i32_9 = arith.constant 0 : i32
    %11 = arith.cmpi ne, %10, %c0_i32_9 : i32
    scf.if %11 {
      %c0_10 = arith.constant 0 : index
      %c0_11 = arith.constant 0 : index
      %12 = vector.load %arg7[%c0_10, %c0_11] : memref<16x96xf32, #tpu.memory_space<vmem>>, vector<16x96xf32>
      %c0_12 = arith.constant 0 : index
      %c0_13 = arith.constant 0 : index
      %13 = vector.load %arg5[%c0_12, %c0_13] : memref<1x96xf32, #tpu.memory_space<vmem>>, vector<1x96xf32>
      %14 = vector.broadcast %13 : vector<1x96xf32> to vector<16x96xf32>
      %15 = arith.addf %12, %14 : vector<16x96xf32>
      %c0_14 = arith.constant 0 : index
      %c0_15 = arith.constant 0 : index
      %16 = vector.load %arg6[%c0_14, %c0_15] : memref<16x96xf32, #tpu.memory_space<vmem>>, vector<16x96xf32>
      tpu.vector_store %arg6[%c0_14, %c0_15], %15 {strides = array<i32>} : memref<16x96xf32, #tpu.memory_space<vmem>>, vector<16x96xf32>,
    } else {
    }
    return
  }
  func.func @transform_0(%arg0: i32, %arg1: i32, %arg2: i32) -> (i32, i32) {
    %c0_i32 = arith.constant 0 : i32
    return %arg0, %arg2 : i32, i32
  }
  func.func @transform_1(%arg0: i32, %arg1: i32, %arg2: i32) -> (i32, i32) {
    %c0_i32 = arith.constant 0 : i32
    return %arg2, %arg1 : i32, i32
  }
  func.func @transform_2(%arg0: i32, %arg1: i32, %arg2: i32) -> (i32, i32) {
    %c0_i32 = arith.constant 0 : i32
    %c0_i32_0 = arith.constant 0 : i32
    return %c0_i32, %arg1 : i32, i32
  }
  func.func @transform_3(%arg0: i32, %arg1: i32, %arg2: i32) -> (i32, i32) {
    %c0_i32 = arith.constant 0 : i32
    return %arg0, %arg1 : i32, i32
  }
}

</mosaic_0001>

<bundles_post_ra>
// kernel: tpu_custom_call.1
= control target key start
LH: loop header
LB: loop body
LE: loop exit
PB: predicated region body
PF: predicated region fallthrough
CT: control target
= control target key end

     0   :  { %8 = vsyncpa [#allocation4], 0  ;;  %s365_s0 = inlined_call_operand.hbm [shape: f32[16,32], index: 0, kind: input, shape index: {}]   ;;  %s366_s1 = inlined_call_operand.hbm [shape: f32[32,96], index: 1, kind: input, shape index: {}]   ;;  %s367_s2 = inlined_call_operand.vmem [shape: f32[1,96], index: 2, kind: input, shape index: {}]   ;;  %s368_s3 = inlined_call_operand.hbm [shape: f32[16,96], index: 3, kind: output, shape index: {}]  }
   0x1   :  { %9 = vsyncpa [#allocation7], 0 }
   0x2   :  { %10 = vsyncpa [#allocation5], 0  ;;  %s285_s12 = smov [#allocation3]   ;;  %s213_s16 = scalar_lea.hbm %s365_s0, 256 }
   0x3   :  { %s16_s13 = sshll.u32 %s285_s12, 4  ;;  %p214_p0 = scmp.ne.s32.totalorder %s365_s0, %s213_s16  ;;  %s17_s13 = int_to_ptr.vmem [resolvable:$true] %s16_s13 }
   0x4   :  { %p217_p1 = scmp.lt.u32.totalorder %s213_s16, %s365_s0 }
   0x6   :  { %p219_p2 = pnand %p217_p1, %p214_p0 }
   0x8   :  { %222 = shalt.err (!%p219_p2)
}
   0x9   :  { %s223_s21 = scalar_lea.vmem %s17_s13, 256  ;;  %p228_p4 = scmp.lt.s32.totalorder %s17_s13, %s17_s13 }
   0xa   :  { %p224_p3 = scmp.ne.s32.totalorder %s17_s13, %s223_s21  ;;  %p229_p5 = scmp.lt.s32.totalorder %s223_s21, %s223_s21 }
   0xc   :  { %p230_p6 = por %p229_p5, %p228_p4 }
   0xe   :  { %p231_p7 = pnand %p230_p6, %p224_p3 }
  0x10   :  { %234 = shalt.err (!%p231_p7)
}
  0x11   :  { %s286_s22 = smov 128   ;;  %s287_s23 = smov 8  }
  0x12   :  { %22 = dma.hbm_to_vmem [thread:$0]  %s365_s0, 256, %s17_s13, [#allocation4], %s286_s22, %s286_s22, %s287_s23  }
  0x13   :  { %s288_s26 = smov [#allocation6]   ;;  %s235_s30 = scalar_lea.hbm %s366_s1, 512 }
  0x14   :  { %s28_s27 = sshll.u32 %s288_s26, 4  ;;  %p236_p8 = scmp.ne.s32.totalorder %s366_s1, %s235_s30  ;;  %s29_s27 = int_to_ptr.vmem [resolvable:$true] %s28_s27 }
  0x15   :  { %p239_p9 = scmp.lt.u32.totalorder %s235_s30, %s366_s1 }
  0x17   :  { %p241_p10 = pnand %p239_p9, %p236_p8 }
  0x19   :  { %244 = shalt.err (!%p241_p10)
}
  0x1a   :  { %s245_s8 = scalar_lea.vmem %s29_s27, 512  ;;  %p250_p12 = scmp.lt.s32.totalorder %s29_s27, %s29_s27 }
  0x1b   :  { %p246_p11 = scmp.ne.s32.totalorder %s29_s27, %s245_s8  ;;  %p251_p13 = scmp.lt.s32.totalorder %s245_s8, %s245_s8 }
  0x1d   :  { %p252_p0 = por %p251_p13, %p250_p12 }
  0x1f   :  { %p253_p1 = pnand %p252_p0, %p246_p11 }
  0x21   :  { %256 = shalt.err (!%p253_p1)
}
  0x22   :  { %34 = dma.hbm_to_vmem [thread:$0]  %s366_s1, 512, %s29_s27, [#allocation7], %s286_s22, %s286_s22, %s287_s23  }
  0x23   :  { %279 = dma.done.wait [#allocation4], 256  }
  0x24   :  { %280 = vsyncadd [#allocation4], 4294967040 }
  0x25   :  { %281 = dma.done.wait [#allocation7], 512  }
  0x26   :  { %282 = vsyncadd [#allocation7], 4294966784  ;;  %vm47_vm0 = vcmask 785408   ;;  %v289_v0 = vmov 0.0   ;;  %vm58_vm1 = vcmask 261120   ;;  %v54_v1 = vld [vmem:[#allocation6] sm:$0xff] }
  0x27   :  { %49 = vst.msk [vmem:[#allocation2 + $0x8] sm:$0xff] %vm47_vm0, %v289_v0  ;;  %48 = vst.msk [vmem:[#allocation2] sm:$0xff] %vm47_vm0, %v289_v0  ;;  %v55_v2 = vld [vmem:[#allocation6 + $0x8] sm:$0xff]  ;;  %v56_v3 = vld [vmem:[#allocation6 + $0x10] sm:$0xff]  ;;  %s290_s11 = smov [#allocation8]  }
  0x28   :  { %v199_v4 = vpack.c.bf16 %v55_v2, %v54_v1  ;;  %v57_v5 = vld [vmem:[#allocation6 + $0x18] sm:$0xff]  ;;  %v52_v6 = vld [vmem:[#allocation3] sm:$0xff]  ;;  %v181_v15 = vld [vmem:[%s367_s2] ss:$0 sm:$0xff]  ;;  %s166_s12 = sshll.u32 %s290_s11, 4  ;;  %s167_s12 = int_to_ptr.vmem [resolvable:$true] %s166_s12 }
  0x29   :  { %v203_v7 = vpack.c.bf16 %v57_v5, %v56_v3  ;;  %196 = vmatprep.mubr.msk.f32.mxu0 %vm58_vm1, %v52_v6  ;;  %v53_v8 = vld [vmem:[#allocation3 + $0x8] sm:$0xff]  ;;  %s257_s13 = scalar_lea.vmem %s167_s12, 256  ;;  %p262_p3 = scmp.lt.s32.totalorder %s167_s12, %s167_s12 }
  0x2a   :  { %200 = vmatprep.subr.bf16.mxu0 %v199_v4  ;;  %p258_p2 = scmp.ne.s32.totalorder %s167_s12, %s257_s13  ;;  %p263_p4 = scmp.lt.s32.totalorder %s257_s13, %s257_s13 }
  0x2b   :  { %202 = vmatpush3.bf16.msra.mxu0 %v199_v4 }
  0x2c   :  { %204 = vmatprep.subr.bf16.mxu0 %v203_v7  ;;  %p264_p5 = por %p263_p4, %p262_p3 }
  0x2e   :  { %v51_v9 = vld [vmem:[#allocation2 + $0x8] sm:$0xff]  ;;  %v50_v10 = vld [vmem:[#allocation2] sm:$0xff]  ;;  %p265_p6 = pnand %p264_p5, %p258_p2 }
  0x2f   :  { %206 = vmatpush3.bf16.msra.mxu0 %v203_v7 }
  0x32   :  { %197 = vmatmul.mubr.msk.f32.vlgmr.msra.gmra.mrb[0].mxu0 %vm58_vm1, %v53_v8 }
 0x105   :  { %v198_v11 = vpop.f32.mrb[0].mxu0 }
 0x106   :  { %v141_v12 = vadd.f32 %v198_v11, %v51_v9  ;;  %v131_v13 = vpop.f32.mrb[1].mxu0 }
 0x107   :  { %v140_v14 = vadd.f32 %v131_v13, %v50_v10 }
 0x108   :  { %144 = vst.msk [vmem:[#allocation2 + $0x8] sm:$0xff] %vm47_vm0, %v141_v12 }
 0x109   :  { %143 = vst.msk [vmem:[#allocation2] sm:$0xff] %vm47_vm0, %v140_v14 }
 0x10f   :  { %v149_v16 = vld [vmem:[#allocation2 + $0x8] sm:$0xff] }
 0x110   :  { %v148_v17 = vld [vmem:[#allocation2] sm:$0xff]  ;;  %v158_v18 = vadd.f32 %v181_v15, %v149_v16 }
 0x111   :  { %v157_v19 = vadd.f32 %v181_v15, %v148_v17 }
 0x112   :  { %160 = vst.msk [vmem:[#allocation8 + $0x8] sm:$0xff] %vm47_vm0, %v158_v18 }
 0x113   :  { %159 = vst.msk [vmem:[#allocation8] sm:$0xff] %vm47_vm0, %v157_v19 }
 0x114   :  { %268 = shalt.err (!%p265_p6)
}
 0x115   :  { %s269_s15 = scalar_lea.hbm %s368_s3, 256 }
 0x116   :  { %p270_p7 = scmp.ne.s32.totalorder %s368_s3, %s269_s15  ;;  %p273_p8 = scmp.lt.u32.totalorder %s269_s15, %s368_s3 }
 0x118   :  { %p275_p9 = pnand %p273_p8, %p270_p7 }
 0x11a   :  { %278 = shalt.err (!%p275_p9)
}
 0x11b   :  { %172 = dma.vmem_to_hbm [thread:$0]  %s167_s12, 256, %s368_s3, [#allocation5], %s286_s22, %s286_s22, %s287_s23  }
 0x11c   :  { %283 = dma.done.wait [#allocation5], 256  }
 0x11d   :  { %284 = vsyncadd [#allocation5], 4294967040 }
 0x11e   :  { %176 = vsyncpa [#allocation4], 1 }
 0x11f   :  { %177 = vsyncpa [#allocation7], 1 }
 0x120   :  { %178 = vsyncpa [#allocation5], 1 }

</bundles_post_ra>
